<compile_context>
chip_gen: v5e
topology: v5e:2x2
jax: 0.10.0
libtpu: 0.0.40
codegen_flags: <defaults>
</compile_context>

<pallas_src>
import functools

import jax
import jax.numpy as jnp
from jax.experimental import pallas as pl
from jax.experimental.pallas import tpu as pltpu


LN_EPS = 1e-5                       # torch.nn.LayerNorm default eps
_VMEM_BUDGET = 40 * 1024 * 1024     # working-set budget (fits v7x's 64 MiB physical VMEM)
_VMEM_LIMIT = 48 * 1024 * 1024      # scoped limit ceiling passed to Mosaic


def _round_up(a, m):
    return (a + m - 1) // m * m


def _layernorm_ref(x, w, b, eps=LN_EPS):
    mu = jnp.mean(x, axis=-1, keepdims=True)
    var = jnp.mean((x - mu) ** 2, axis=-1, keepdims=True)
    return (x - mu) * jax.lax.rsqrt(var + eps) * w + b


def _layernorm_padded(x, w, b, true_dim, pad_dim, eps=LN_EPS):
    """LayerNorm over the first `true_dim` lanes of a zero-padded `pad_dim`-wide tile.

    Requires x[:, true_dim:] == 0.  Padded lanes of w/b are zero, so padded output
    lanes stay exactly zero.
    """
    inv_n = 1.0 / true_dim
    mu = jnp.sum(x, axis=-1, keepdims=True) * inv_n
    d = x - mu
    ss = jnp.sum(d * d, axis=-1, keepdims=True)
    if pad_dim != true_dim:
        # Each padded (zero) lane contributed exactly mu^2 to ss; remove that.
        ss = ss - (pad_dim - true_dim) * (mu * mu)
    var = ss * inv_n
    return d * jax.lax.rsqrt(var + eps) * w + b


def _resblock_kernel(x_ref, packed_ref, w1_ref, w2_ref, o_ref, *,
                     ninput, ninput_p, nhidden_p, mxu_dtype):
    """One row-tile of the residual block.

    x_ref:      (rows, Hp)    streamed, double-buffered
    packed_ref: (8, D)        grid-invariant, single-buffered f32 small params
                  row 0: ln1 weight   row 1: ln1 bias
                  row 2: ln2 weight   row 3: ln2 bias
                  row 4: b2 (width Hp)   row 5: b1 (width NHp)
    w1_ref:     (Hp, NHp)     grid-invariant, single-buffered (W1.T, zero-padded, mxu_dtype)
    w2_ref:     (NHp, Hp)     grid-invariant, single-buffered (W2.T, zero-padded, mxu_dtype)
    """
    x = x_ref[...].astype(jnp.float32)               # (rows, Hp)
    pk = packed_ref[...]                              # (8, D) f32

    ln1_w = pk[0:1, :ninput_p]
    ln1_b = pk[1:2, :ninput_p]
    ln2_w = pk[2:3, :ninput_p]
    ln2_b = pk[3:4, :ninput_p]
    b2 = pk[4:5, :ninput_p]
    b1 = pk[5:6, :nhidden_p]

    # LayerNorm / elementwise math in f32 (v5e VPU/EUP have no bf16 path).
    xn = _layernorm_padded(x, ln1_w, ln1_b, ninput, ninput_p)             # norm_input

    # MXU in bf16 (or mxu_dtype) with f32 accumulation.
    z = jnp.dot(xn.astype(mxu_dtype), w1_ref[...],
                preferred_element_type=jnp.float32) + b1                   # linear_1
    z = jnp.maximum(z, 0.0)                                                # ReLU
    z = jnp.dot(z.astype(mxu_dtype), w2_ref[...],
                preferred_element_type=jnp.float32) + b2                   # linear_2

    y = _layernorm_padded(z, ln2_w, ln2_b, ninput, ninput_p) + xn          # norm2 + xn
    o_ref[...] = y.astype(o_ref.dtype)


def _vmem_estimate(tr, hp, nhp, d, x_bytes, out_bytes, w_bytes):
    stream = 2 * tr * hp * x_bytes + 2 * tr * hp * out_bytes   # double-buffered x / out tiles
    resident = 8 * d * 4 + 2 * hp * nhp * w_bytes              # packed params + W1 + W2 (1-buffered)
    scratch = tr * nhp * 4 + 3 * tr * hp * 4                   # z intermediate + f32 temporaries
    return stream + resident + scratch


def res_block_layer_norm(x, params, *, block_rows=1024, mxu_dtype=jnp.bfloat16):
    """Apply ResBlockLayerNorm to x of shape (..., ninput).

    params = (ln1_w, ln1_b, w1, b1, w2, b2, ln2_w, ln2_b)
      w1: (ninput, nhidden)  (torch linear_1.weight.T)
      w2: (nhidden, ninput)  (torch linear_2.weight.T)
    """
    ln1_w, ln1_b, w1, b1, w2, b2, ln2_w, ln2_b = params
    H = x.shape[-1]
    NH = w1.shape[1]
    orig_shape = x.shape
    out_dtype = x.dtype

    # Lane-dense padding of feature axes (unmasked stores, full MXU tiles).
    Hp = _round_up(H, 128)
    NHp = _round_up(NH, 128)
    D = max(Hp, NHp)

    x_bytes = jnp.dtype(x.dtype).itemsize
    out_bytes = jnp.dtype(out_dtype).itemsize
    w_bytes = jnp.dtype(mxu_dtype).itemsize

    if 2 * Hp * NHp * w_bytes > _VMEM_BUDGET:
        # TODO(synk): stream W1/W2 over an extra "arbitrary" nhidden grid axis when the
        # weights alone exceed the VMEM budget (not needed for nhidden ~ 100).
        raise NotImplementedError("W1/W2 exceed the VMEM budget; nhidden too large")

    # Flatten leading dims -> rows.
    x2 = x.reshape(-1, H)
    n = x2.shape[0]

    # Row tile: as large as VMEM allows (amortize ~0.35us per grid step), multiple of 16
    # (bf16 sublane packing), and >= 2 grid steps when possible (v7x has 2 TensorCores).
    tr = min(block_rows, _round_up(n, 16))
    tr = max(16, tr // 16 * 16)
    while tr > 16 and _vmem_estimate(tr, Hp, NHp, D, x_bytes, out_bytes, w_bytes) > _VMEM_BUDGET:
        tr = max(16, (tr // 2) // 16 * 16)
    if n > 16 and _round_up(n, tr) // tr < 2:
        tr = min(tr, _round_up((n + 1) // 2, 16))
    n_pad = _round_up(n, tr)

    # Zero-pad rows and feature lanes.  Padded rows go through eps-protected LayerNorms
    # (finite output) and are sliced off; padded feature lanes stay exactly zero through
    # the whole pipeline because their weights/biases are zero.  Do not remove eps or
    # the final slice.
    x2 = jnp.pad(x2, ((0, n_pad - n), (0, Hp - H)))

    # Pack the six small per-feature vectors into one (8, D) sublane-aligned f32 slab
    # -> a single grid-invariant DMA.
    def _row(v):
        v = v.astype(jnp.float32).reshape(1, -1)
        return jnp.pad(v, ((0, 0), (0, D - v.shape[-1])))

    packed = jnp.concatenate(
        [_row(ln1_w), _row(ln1_b), _row(ln2_w), _row(ln2_b),
         _row(b2), _row(b1), jnp.zeros((2, D), jnp.float32)],
        axis=0)                                                   # (8, D)

    w1p = jnp.pad(w1.astype(jnp.float32), ((0, Hp - H), (0, NHp - NH))).astype(mxu_dtype)
    w2p = jnp.pad(w2.astype(jnp.float32), ((0, NHp - NH), (0, Hp - H))).astype(mxu_dtype)

    kernel = functools.partial(
        _resblock_kernel, ninput=H, ninput_p=Hp, nhidden_p=NHp, mxu_dtype=mxu_dtype)

    flops = n_pad * (4 * Hp * NHp + 14 * Hp + 2 * NHp)
    bytes_accessed = (n_pad * Hp * (x_bytes + out_bytes)
                      + 2 * Hp * NHp * w_bytes + 8 * D * 4)
    vmem_limit = min(
        _VMEM_LIMIT,
        max(8 << 20,
            int(1.25 * _vmem_estimate(tr, Hp, NHp, D, x_bytes, out_bytes, w_bytes))))

    out = pl.pallas_call(
        kernel,
        out_shape=jax.ShapeDtypeStruct((n_pad, Hp), out_dtype),
        grid_spec=pltpu.PrefetchScalarGridSpec(
            num_scalar_prefetch=0,
            grid=(n_pad // tr,),
            in_specs=[
                pl.BlockSpec((tr, Hp), lambda i: (i, 0)),             # x: streamed
                pl.BlockSpec((8, D), lambda i: (0, 0),
                             pipeline_mode=pl.Buffered(1)),           # small params: resident
                pl.BlockSpec((Hp, NHp), lambda i: (0, 0),
                             pipeline_mode=pl.Buffered(1)),           # W1: resident
                pl.BlockSpec((NHp, Hp), lambda i: (0, 0),
                             pipeline_mode=pl.Buffered(1)),           # W2: resident
            ],
            out_specs=pl.BlockSpec((tr, Hp), lambda i: (i, 0)),
        ),
        compiler_params=pltpu.CompilerParams(
            dimension_semantics=("parallel",),                        # shard row tiles across TCs
            vmem_limit_bytes=vmem_limit,
        ),
        cost_estimate=pl.CostEstimate(
            flops=flops,
            transcendentals=2 * n_pad,                                # two rsqrt per row
            bytes_accessed=bytes_accessed,
        ),
    )(x2, packed, w1p, w2p)

    return out[:n, :H].reshape(orig_shape)


# ----------------------------- reference & test ----------------------------- #

def init_params(key, H, NH):
    """Deterministic synthetic init (torch-Linear-style uniform bounds)."""
    k1, k2, k3, k4 = jax.random.split(key, 4)

    def lin(k, fan_in, fan_out):
        bound = 1.0 / jnp.sqrt(fan_in)
        kw, kb = jax.random.split(k)
        w = jax.random.uniform(kw, (fan_in, fan_out), jnp.float32, -bound, bound)
        b = jax.random.uniform(kb, (fan_out,), jnp.float32, -bound, bound)
        return w, b

    def ln_affine(k, dim):
        kw, kb = jax.random.split(k)
        w = 1.0 + 0.01 * jax.random.normal(kw, (dim,), jnp.float32)
        b = 0.01 * jax.random.normal(kb, (dim,), jnp.float32)
        return w, b

    ln1_w, ln1_b = ln_affine(k1, H)
    w1, b1 = lin(k2, H, NH)
    w2, b2 = lin(k3, NH, H)
    ln2_w, ln2_b = ln_affine(k4, H)
    return (ln1_w, ln1_b, w1, b1, w2, b2, ln2_w, ln2_b)


def reference_forward(x, params, matmul_dtype=jnp.float32):
    """Pure-JAX mirror of the PyTorch forward (optionally with bf16 MXU operands)."""
    ln1_w, ln1_b, w1, b1, w2, b2, ln2_w, ln2_b = params
    xn = _layernorm_ref(x, ln1_w, ln1_b)
    z = jnp.dot(xn.astype(matmul_dtype), w1.astype(matmul_dtype),
                preferred_element_type=jnp.float32) + b1
    z = jnp.maximum(z, 0.0)
    z = jnp.dot(z.astype(matmul_dtype), w2.astype(matmul_dtype),
                preferred_element_type=jnp.float32) + b2
    return _layernorm_ref(z, ln2_w, ln2_b) + xn


if __name__ == "__main__":
    # Small shapes consistent with the module: batch=2, seq=8, ninput=32, nhidden=64.
    B, T, H, NH = 2, 8, 32, 64

    key = jax.random.PRNGKey(0)
    kx, kp = jax.random.split(key)
    x = jax.random.normal(kx, (B, T, H), jnp.float32)
    params = init_params(kp, H, NH)

    out = jax.block_until_ready(res_block_layer_norm(x, params))

    ref_matched = reference_forward(x, params, matmul_dtype=jnp.bfloat16)  # same MXU precision
    ref_exact = reference_forward(x, params, matmul_dtype=jnp.float32)     # full-f32 semantics

    assert out.shape == x.shape, out.shape
    assert out.dtype == x.dtype, out.dtype
    err_matched = float(jnp.max(jnp.abs(out - ref_matched)))
    err_exact = float(jnp.max(jnp.abs(out - ref_exact)))
    assert err_matched < 1e-2, (err_matched, err_exact)
    assert err_exact < 0.5, (err_matched, err_exact)

    print("KERNEL_OK")
</pallas_src>

<mosaic_0001>
module attributes {stable_mosaic.version = 11 : i64} {
  func.func @_resblock_kernel(%arg0: i32, %arg1: memref<16x128xf32, #tpu.memory_space<vmem>>, %arg2: memref<8x128xf32, #tpu.memory_space<vmem>>, %arg3: memref<128x128xbf16, #tpu.memory_space<vmem>>, %arg4: memref<128x128xbf16, #tpu.memory_space<vmem>>, %arg5: memref<16x128xf32, #tpu.memory_space<vmem>>) attributes {dimension_semantics = [#tpu.dimension_semantics<parallel>], iteration_bounds = array<i64: 1>, scalar_prefetch = 0 : i64, scratch_operands = 0 : i64, tpu.core_type = #tpu.core_type<tc>, window_params = [{transform_indices = @transform_0, window_bounds = array<i64: 16, 128>}, {pipeline_mode = #tpu.pipeline_mode<synchronous>, transform_indices = @transform_1, window_bounds = array<i64: 8, 128>}, {pipeline_mode = #tpu.pipeline_mode<synchronous>, transform_indices = @transform_2, window_bounds = array<i64: 128, 128>}, {pipeline_mode = #tpu.pipeline_mode<synchronous>, transform_indices = @transform_3, window_bounds = array<i64: 128, 128>}, {transform_indices = @transform_4, window_bounds = array<i64: 16, 128>}]} {
    %c0 = arith.constant 0 : index
    %c0_0 = arith.constant 0 : index
    %0 = vector.load %arg1[%c0, %c0_0] : memref<16x128xf32, #tpu.memory_space<vmem>>, vector<16x128xf32>
    %c0_1 = arith.constant 0 : index
    %c0_2 = arith.constant 0 : index
    %1 = vector.load %arg2[%c0_1, %c0_2] : memref<8x128xf32, #tpu.memory_space<vmem>>, vector<8x128xf32>
    %2 = vector.extract_strided_slice %1 {offsets = [0, 0], sizes = [1, 128], strides = [1, 1]} : vector<8x128xf32> to vector<1x128xf32>
    %3 = vector.extract_strided_slice %1 {offsets = [1, 0], sizes = [1, 128], strides = [1, 1]} : vector<8x128xf32> to vector<1x128xf32>
    %4 = vector.extract_strided_slice %1 {offsets = [2, 0], sizes = [1, 128], strides = [1, 1]} : vector<8x128xf32> to vector<1x128xf32>
    %5 = vector.extract_strided_slice %1 {offsets = [3, 0], sizes = [1, 128], strides = [1, 1]} : vector<8x128xf32> to vector<1x128xf32>
    %6 = vector.extract_strided_slice %1 {offsets = [4, 0], sizes = [1, 128], strides = [1, 1]} : vector<8x128xf32> to vector<1x128xf32>
    %7 = vector.extract_strided_slice %1 {offsets = [5, 0], sizes = [1, 128], strides = [1, 1]} : vector<8x128xf32> to vector<1x128xf32>
    %cst = arith.constant dense<0.000000e+00> : vector<16xf32>
    %8 = vector.multi_reduction <add>, %0, %cst [1] : vector<16x128xf32> to vector<16xf32>
    %9 = vector.shape_cast %8 : vector<16xf32> to vector<16x1xf32>
    %cst_3 = arith.constant 3.125000e-02 : f32
    %10 = vector.broadcast %cst_3 : f32 to vector<16x1xf32>
    %11 = arith.mulf %9, %10 : vector<16x1xf32>
    %12 = vector.broadcast %11 : vector<16x1xf32> to vector<16x128xf32>
    %13 = arith.subf %0, %12 : vector<16x128xf32>
    %14 = arith.mulf %13, %13 : vector<16x128xf32>
    %cst_4 = arith.constant dense<0.000000e+00> : vector<16xf32>
    %15 = vector.multi_reduction <add>, %14, %cst_4 [1] : vector<16x128xf32> to vector<16xf32>
    %16 = vector.shape_cast %15 : vector<16xf32> to vector<16x1xf32>
    %17 = arith.mulf %11, %11 : vector<16x1xf32>
    %cst_5 = arith.constant 9.600000e+01 : f32
    %18 = vector.broadcast %cst_5 : f32 to vector<16x1xf32>
    %19 = arith.mulf %18, %17 : vector<16x1xf32>
    %20 = arith.subf %16, %19 : vector<16x1xf32>
    %cst_6 = arith.constant 3.125000e-02 : f32
    %21 = vector.broadcast %cst_6 : f32 to vector<16x1xf32>
    %22 = arith.mulf %20, %21 : vector<16x1xf32>
    %cst_7 = arith.constant 9.99999974E-6 : f32
    %23 = vector.broadcast %cst_7 : f32 to vector<16x1xf32>
    %24 = arith.addf %22, %23 : vector<16x1xf32>
    %25 = math.rsqrt %24 : vector<16x1xf32>
    %26 = vector.broadcast %25 : vector<16x1xf32> to vector<16x128xf32>
    %27 = arith.mulf %13, %26 : vector<16x128xf32>
    %28 = vector.broadcast %2 : vector<1x128xf32> to vector<16x128xf32>
    %29 = arith.mulf %27, %28 : vector<16x128xf32>
    %30 = vector.broadcast %3 : vector<1x128xf32> to vector<16x128xf32>
    %31 = arith.addf %29, %30 : vector<16x128xf32>
    %32 = arith.truncf %31 : vector<16x128xf32> to vector<16x128xbf16>
    %c0_8 = arith.constant 0 : index
    %c0_9 = arith.constant 0 : index
    %33 = vector.load %arg3[%c0_8, %c0_9] : memref<128x128xbf16, #tpu.memory_space<vmem>>, vector<128x128xbf16>
    %cst_10 = arith.constant dense<0.000000e+00> : vector<16x128xf32>
    %34 = tpu.matmul %32, %33, %cst_10 {dimension_numbers = #tpu.dot_dimension_numbers<[1], [0], [0], [1], [0, 0, 1, 1], [], []>} : vector<16x128xbf16>, vector<128x128xbf16>, vector<16x128xf32> -> vector<16x128xf32>
    %35 = vector.broadcast %7 : vector<1x128xf32> to vector<16x128xf32>
    %36 = arith.addf %34, %35 : vector<16x128xf32>
    %cst_11 = arith.constant 0.000000e+00 : f32
    %37 = vector.broadcast %cst_11 : f32 to vector<16x128xf32>
    %38 = arith.maximumf %36, %37 : vector<16x128xf32>
    %39 = arith.truncf %38 : vector<16x128xf32> to vector<16x128xbf16>
    %c0_12 = arith.constant 0 : index
    %c0_13 = arith.constant 0 : index
    %40 = vector.load %arg4[%c0_12, %c0_13] : memref<128x128xbf16, #tpu.memory_space<vmem>>, vector<128x128xbf16>
    %cst_14 = arith.constant dense<0.000000e+00> : vector<16x128xf32>
    %41 = tpu.matmul %39, %40, %cst_14 {dimension_numbers = #tpu.dot_dimension_numbers<[1], [0], [0], [1], [0, 0, 1, 1], [], []>} : vector<16x128xbf16>, vector<128x128xbf16>, vector<16x128xf32> -> vector<16x128xf32>
    %42 = vector.broadcast %6 : vector<1x128xf32> to vector<16x128xf32>
    %43 = arith.addf %41, %42 : vector<16x128xf32>
    %cst_15 = arith.constant dense<0.000000e+00> : vector<16xf32>
    %44 = vector.multi_reduction <add>, %43, %cst_15 [1] : vector<16x128xf32> to vector<16xf32>
    %45 = vector.shape_cast %44 : vector<16xf32> to vector<16x1xf32>
    %cst_16 = arith.constant 3.125000e-02 : f32
    %46 = vector.broadcast %cst_16 : f32 to vector<16x1xf32>
    %47 = arith.mulf %45, %46 : vector<16x1xf32>
    %48 = vector.broadcast %47 : vector<16x1xf32> to vector<16x128xf32>
    %49 = arith.subf %43, %48 : vector<16x128xf32>
    %50 = arith.mulf %49, %49 : vector<16x128xf32>
    %cst_17 = arith.constant dense<0.000000e+00> : vector<16xf32>
    %51 = vector.multi_reduction <add>, %50, %cst_17 [1] : vector<16x128xf32> to vector<16xf32>
    %52 = vector.shape_cast %51 : vector<16xf32> to vector<16x1xf32>
    %53 = arith.mulf %47, %47 : vector<16x1xf32>
    %cst_18 = arith.constant 9.600000e+01 : f32
    %54 = vector.broadcast %cst_18 : f32 to vector<16x1xf32>
    %55 = arith.mulf %54, %53 : vector<16x1xf32>
    %56 = arith.subf %52, %55 : vector<16x1xf32>
    %cst_19 = arith.constant 3.125000e-02 : f32
    %57 = vector.broadcast %cst_19 : f32 to vector<16x1xf32>
    %58 = arith.mulf %56, %57 : vector<16x1xf32>
    %cst_20 = arith.constant 9.99999974E-6 : f32
    %59 = vector.broadcast %cst_20 : f32 to vector<16x1xf32>
    %60 = arith.addf %58, %59 : vector<16x1xf32>
    %61 = math.rsqrt %60 : vector<16x1xf32>
    %62 = vector.broadcast %61 : vector<16x1xf32> to vector<16x128xf32>
    %63 = arith.mulf %49, %62 : vector<16x128xf32>
    %64 = vector.broadcast %4 : vector<1x128xf32> to vector<16x128xf32>
    %65 = arith.mulf %63, %64 : vector<16x128xf32>
    %66 = vector.broadcast %5 : vector<1x128xf32> to vector<16x128xf32>
    %67 = arith.addf %65, %66 : vector<16x128xf32>
    %68 = arith.addf %67, %31 : vector<16x128xf32>
    %c0_21 = arith.constant 0 : index
    %c0_22 = arith.constant 0 : index
    %69 = vector.load %arg5[%c0_21, %c0_22] : memref<16x128xf32, #tpu.memory_space<vmem>>, vector<16x128xf32>
    tpu.vector_store %arg5[%c0_21, %c0_22], %68 {strides = array<i32>} : memref<16x128xf32, #tpu.memory_space<vmem>>, vector<16x128xf32>,
    return
  }
  func.func @transform_0(%arg0: i32) -> (i32, i32) {
    %c0_i32 = arith.constant 0 : i32
    %c0_i32_0 = arith.constant 0 : i32
    return %arg0, %c0_i32 : i32, i32
  }
  func.func @transform_1(%arg0: i32) -> (i32, i32) {
    %c0_i32 = arith.constant 0 : i32
    %c0_i32_0 = arith.constant 0 : i32
    %c0_i32_1 = arith.constant 0 : i32
    return %c0_i32, %c0_i32_0 : i32, i32
  }
  func.func @transform_2(%arg0: i32) -> (i32, i32) {
    %c0_i32 = arith.constant 0 : i32
    %c0_i32_0 = arith.constant 0 : i32
    %c0_i32_1 = arith.constant 0 : i32
    return %c0_i32, %c0_i32_0 : i32, i32
  }
  func.func @transform_3(%arg0: i32) -> (i32, i32) {
    %c0_i32 = arith.constant 0 : i32
    %c0_i32_0 = arith.constant 0 : i32
    %c0_i32_1 = arith.constant 0 : i32
    return %c0_i32, %c0_i32_0 : i32, i32
  }
  func.func @transform_4(%arg0: i32) -> (i32, i32) {
    %c0_i32 = arith.constant 0 : i32
    %c0_i32_0 = arith.constant 0 : i32
    return %arg0, %c0_i32 : i32, i32
  }
}

</mosaic_0001>

<bundles_post_ra>
// kernel: tpu_custom_call.1
= control target key start
LH: loop header
LB: loop body
LE: loop exit
PB: predicated region body
PF: predicated region fallthrough
CT: control target
= control target key end

     0   :  { %9 = vsyncpa [#allocation3], 0  ;;  %s679_s0 = inlined_call_operand.hbm [shape: f32[16,128], index: 0, kind: input, shape index: {}]   ;;  %s680_s1 = inlined_call_operand.hbm [shape: f32[8,128], index: 1, kind: input, shape index: {}]   ;;  %s681_s2 = inlined_call_operand.hbm [shape: bf16[128,128], index: 2, kind: input, shape index: {}]   ;;  %s682_s3 = inlined_call_operand.hbm [shape: bf16[128,128], index: 3, kind: input, shape index: {}]   ;;  %s683_s4 = inlined_call_operand.hbm [shape: f32[16,128], index: 4, kind: output, shape index: {}]  }
   0x1   :  { %10 = vsyncpa [#allocation6], 0 }
   0x2   :  { %11 = vsyncpa [#allocation9], 0  ;;  %s31_s17 = sshll.u32 %s680_s1, 4  ;;  %s32_s17 = int_to_ptr.hbm [resolvable:$true] %s31_s17 }
   0x3   :  { %12 = vsyncpa [#allocation4], 0  ;;  %s598_s18 = smov [#allocation5]   ;;  %s17_s22 = sshll.u32 %s679_s0, 4  ;;  %s18_s22 = int_to_ptr.hbm [resolvable:$true] %s17_s22 }
   0x4   :  { %s33_s19 = sshll.u32 %s598_s18, 4  ;;  %s599_s23 = smov [#allocation2]   ;;  %s34_s19 = int_to_ptr.vmem [resolvable:$true] %s33_s19 }
   0x5   :  { %36 = dma.hbm_to_vmem [thread:$0]  %s32_s17, 128, %s34_s19, [#allocation6]  }
   0x6   :  { %s19_s24 = sshll.u32 %s599_s23, 4  ;;  %s600_s25 = smov 128   ;;  %s20_s24 = int_to_ptr.vmem [resolvable:$true] %s19_s24 }
   0x7   :  { %s601_s26 = smov 8   ;;  %s41_s28 = sshll.u32 %s681_s2, 4  ;;  %s42_s28 = int_to_ptr.hbm [resolvable:$true] %s41_s28 }
   0x8   :  { %25 = dma.hbm_to_vmem [thread:$0]  %s18_s22, 256, %s20_s24, [#allocation3], %s600_s25, %s600_s25, %s601_s26  }
   0x9   :  { %s602_s29 = smov [#allocation7]   ;;  %s54_s6 = sshll.u32 %s682_s3, 4  ;;  %s55_s6 = int_to_ptr.hbm [resolvable:$true] %s54_s6 }
   0xa   :  { %s43_s30 = sshll.u32 %s602_s29, 4  ;;  %s603_s7 = smov 64   ;;  %s44_s30 = int_to_ptr.vmem [resolvable:$true] %s43_s30 }
   0xb   :  { %s604_s8 = smov 4   ;;  %s605_s9 = smov [#allocation8]  }
   0xc   :  { %49 = dma.hbm_to_vmem [thread:$0]  %s42_s28, 1024, %s44_s30, [#allocation6], %s603_s7, %s603_s7, %s604_s8  }
   0xd   :  { %s56_s10 = sshll.u32 %s605_s9, 4  ;;  %s57_s10 = int_to_ptr.vmem [resolvable:$true] %s56_s10 }
   0xe   :  { %62 = dma.hbm_to_vmem [thread:$0]  %s55_s6, 1024, %s57_s10, [#allocation9], %s603_s7, %s603_s7, %s604_s8  }
   0xf   :  { %590 = dma.done.wait [#allocation3], 256  }
  0x10   :  { %591 = vsyncadd [#allocation3], 4294967040 }
  0x11   :  { %592 = dma.done.wait [#allocation6], 1152  }
  0x12   :  { %593 = vsyncadd [#allocation6], 4294966144 }
  0x13   :  { %594 = dma.done.wait [#allocation9], 1024  }
  0x14   :  { %595 = vsyncadd [#allocation9], 4294966272  ;;  %v79_v0 = vld [vmem:[#allocation2] sm:$0xff]  ;;  %v80_v1 = vld [vmem:[#allocation2 + $0x8] sm:$0xff]  ;;  %s606_s2 = smov [#allocation10]   ;;  %s358_s13 = sshll.u32 %s683_s4, 4  ;;  %s359_s13 = int_to_ptr.hbm [resolvable:$true] %s358_s13 }
  0x15   :  { %82 = vadd.xlane.f32.xlu0 %v79_v0  ;;  %v444_v10 = vld [vmem:[#allocation7 + $0x38] sm:$0xff]  ;;  %v443_v11 = vld [vmem:[#allocation7 + $0x30] sm:$0xff]  ;;  %v442_v12 = vld [vmem:[#allocation7 + $0x28] sm:$0xff]  ;;  %s356_s3 = sshll.u32 %s606_s2, 4  ;;  %s357_s3 = int_to_ptr.vmem [resolvable:$true] %s356_s3 }
  0x16   :  { %200 = vmatpush.bf16.msra.mxu0 %v444_v10  ;;  %v441_v13 = vld [vmem:[#allocation7 + $0x20] sm:$0xff]  ;;  %v440_v14 = vld [vmem:[#allocation7 + $0x18] sm:$0xff]  ;;  %v439_v16 = vld [vmem:[#allocation7 + $0x10] sm:$0xff] }
  0x17   :  { %v438_v17 = vld [vmem:[#allocation7 + $0x8] sm:$0xff]  ;;  %v437_v21 = vld [vmem:[#allocation7] sm:$0xff]  ;;  %v452_v28 = vld [vmem:[#allocation8 + $0x38] sm:$0xff] }
  0x18   :  { %282 = vmatpush.bf16.msra.mxu1 %v452_v28  ;;  %v451_v30 = vld [vmem:[#allocation8 + $0x30] sm:$0xff]  ;;  %v450_v34 = vld [vmem:[#allocation8 + $0x28] sm:$0xff]  ;;  %v449_v37 = vld [vmem:[#allocation8 + $0x20] sm:$0xff] }
  0x19   :  { %v655_v44 = vld [vmem:[#allocation5] sm:$0xff]  ;;  %v447_v59 = vld [vmem:[#allocation8 + $0x10] sm:$0xff]  ;;  %v446_v60 = vld [vmem:[#allocation8 + $0x8] sm:$0xff] }
  0x1a   :  { %201 = vmatpush.bf16.msra.mxu0 %v443_v11  ;;  %v128_v48 = vperm.slane %v655_v44, 0  ;;  %v131_v53 = vperm.slane %v655_v44, 1  ;;  %v448_v58 = vld [vmem:[#allocation8 + $0x18] sm:$0xff]  ;;  %v445_v61 = vld [vmem:[#allocation8] sm:$0xff]  ;;  %v151_v63 = vperm.slane %v655_v44, 5 }
  0x1c   :  { %283 = vmatpush.bf16.msra.mxu1 %v451_v30 }
  0x1d   :  { %84 = vadd.xlane.f32.xlu0 %v80_v1 }
  0x1e   :  { %202 = vmatpush.bf16.msra.mxu0 %v442_v12 }
  0x20   :  { %284 = vmatpush.bf16.msra.mxu1 %v450_v34 }
  0x22   :  { %203 = vmatpush.bf16.msra.mxu0 %v441_v13 }
  0x24   :  { %285 = vmatpush.bf16.msra.mxu1 %v449_v37 }
  0x26   :  { %204 = vmatpush.bf16.msra.mxu0 %v440_v14 }
  0x28   :  { %286 = vmatpush.bf16.msra.mxu1 %v448_v58 }
  0x2a   :  { %205 = vmatpush.bf16.msra.mxu0 %v439_v16 }
  0x2c   :  { %287 = vmatpush.bf16.msra.mxu1 %v447_v59 }
  0x2e   :  { %206 = vmatpush.bf16.msra.mxu0 %v438_v17 }
  0x30   :  { %288 = vmatpush.bf16.msra.mxu1 %v446_v60 }
  0x32   :  { %207 = vmatpush.bf16.msra.mxu0 %v437_v21 }
  0x34   :  { %289 = vmatpush.bf16.msra.mxu1 %v445_v61 }
  0x88   :  { %v83_v2 = vpop.xlane.xlu0 %82 }
  0x89   :  { %v86_v3 = vmul.f32 0.03125, %v83_v2 }
  0x8b   :  { %v647_v4 = vsub.f32 %v79_v0, %v86_v3  ;;  %v96_v15 = vmul.f32 %v86_v3, %v86_v3 }
  0x8d   :  { %v90_v5 = vmul.f32 %v647_v4, %v647_v4  ;;  %v98_v18 = vmul.f32 96.0, %v96_v15 }
  0x8f   :  { %92 = vadd.xlane.f32.xlu1 %v90_v5 }
  0x90   :  { %v85_v6 = vpop.xlane.xlu0 %84 }
  0x91   :  { %v87_v7 = vmul.f32 0.03125, %v85_v6  ;;  %v233_v6 = vperm.slane %v655_v44, 4 }
  0x93   :  { %v651_v8 = vsub.f32 %v80_v1, %v87_v7  ;;  %v97_v22 = vmul.f32 %v87_v7, %v87_v7 }
  0x95   :  { %v91_v9 = vmul.f32 %v651_v8, %v651_v8  ;;  %v99_v25 = vmul.f32 96.0, %v97_v22 }
  0x97   :  { %94 = vadd.xlane.f32.xlu1 %v91_v9 }
 0x102   :  { %v93_v19 = vpop.xlane.xlu1 %92 }
 0x103   :  { %v100_v20 = vsub.f32 %v93_v19, %v98_v18 }
 0x105   :  { %v102_v23 = vmul.f32 0.03125, %v100_v20 }
 0x107   :  { %v104_v24 = vadd.f32 1e-05, %v102_v23 }
 0x109   :  { %462 = vrsqrt.f32 %v104_v24  ;;  %vm112_vm1 = vweird.f32 %v104_v24 }
 0x10a   :  { %v95_v26 = vpop.xlane.xlu1 %94 }
 0x10b   :  { %v101_v27 = vsub.f32 %v95_v26, %v99_v25 }
 0x10d   :  { %v103_v29 = vmul.f32 0.03125, %v101_v27 }
 0x10f   :  { %v463_v31 = vpop.eup %462  ;;  %v105_v32 = vadd.f32 1e-05, %v103_v29 }
 0x110   :  { %v107_v33 = vmul.f32 %v463_v31, %v104_v24  ;;  %vm113_vm0 = vweird.f32 %v463_v31 }
 0x111   :  { %464 = vrsqrt.f32 %v105_v32  ;;  %vm114_vm2 = vmor %vm112_vm1, %vm113_vm0  ;;  %vm122_vm4 = vweird.f32 %v105_v32 }
 0x112   :  { %v108_v35 = vmul.f32 %v463_v31, %v107_v33 }
 0x114   :  { %v109_v36 = vmul.f32 0.5, %v108_v35 }
 0x116   :  { %v110_v38 = vsub.f32 1.5, %v109_v36 }
 0x117   :  { %v465_v39 = vpop.eup %464 }
 0x118   :  { %v111_v40 = vmul.f32 %v463_v31, %v110_v38  ;;  %v117_v41 = vmul.f32 %v465_v39, %v105_v32  ;;  %vm123_vm3 = vweird.f32 %v465_v39 }
 0x119   :  { %vm124_vm5 = vmor %vm122_vm4, %vm123_vm3 }
 0x11a   :  { %v118_v42 = vmul.f32 %v465_v39, %v117_v41  ;;  %v115_v45 = vsel %vm114_vm2, %v463_v31, %v111_v40 }
 0x11b   :  { %v126_v47 = vmul.f32 %v115_v45, %v647_v4 }
 0x11c   :  { %v119_v43 = vmul.f32 0.5, %v118_v42 }
 0x11d   :  { %v129_v52 = vmul.f32 %v128_v48, %v126_v47 }
 0x11e   :  { %v120_v46 = vsub.f32 1.5, %v119_v43  ;;  %v345_v43 = vperm.slane %v655_v44, 3 }
 0x11f   :  { %v661_v55 = vadd.f32 %v131_v53, %v129_v52 }
 0x120   :  { %v121_v49 = vmul.f32 %v465_v39, %v120_v46 }
 0x122   :  { %v125_v50 = vsel %vm124_vm5, %v465_v39, %v121_v49  ;;  %v342_v39 = vperm.slane %v655_v44, 2 }
 0x123   :  { %v127_v51 = vmul.f32 %v125_v50, %v651_v8 }
 0x125   :  { %v130_v54 = vmul.f32 %v128_v48, %v127_v51 }
 0x127   :  { %v663_v56 = vadd.f32 %v131_v53, %v130_v54 }
 0x129   :  { %v134_v57 = vpack.c.bf16 %v663_v56, %v661_v55 }
 0x12b   :  { %208 = vmatmul.bf16.vlgmr.msra.gmra.mxu0 %v134_v57 }
 0x1a8   :  { %v209_v62 = vpop.f32.mrf.mxu0 }
 0x1a9   :  { %v210_v0 = vadd.f32 %v209_v62, %v151_v63 }
 0x1ab   :  { %v214_v3 = vmax.f32 %v210_v0, 0.0 }
 0x1b0   :  { %v211_v1 = vpop.f32.mrf.mxu0 }
 0x1b1   :  { %v212_v2 = vadd.f32 %v211_v1, %v151_v63 }
 0x1b3   :  { %v215_v4 = vmax.f32 %v212_v2, 0.0 }
 0x1b5   :  { %v216_v5 = vpack.c.bf16 %v215_v4, %v214_v3 }
 0x1b7   :  { %290 = vmatmul.bf16.vlgmr.msra.gmra.mxu1 %v216_v5 }
 0x234   :  { %v291_v7 = vpop.f32.mrf.mxu1 }
 0x235   :  { %v292_v8 = vadd.f32 %v291_v7, %v233_v6 }
 0x237   :  { %296 = vadd.xlane.f32.xlu2 %v292_v8 }
 0x23c   :  { %v293_v9 = vpop.f32.mrf.mxu1 }
 0x23d   :  { %v294_v10 = vadd.f32 %v293_v9, %v233_v6 }
 0x23f   :  { %298 = vadd.xlane.f32.xlu2 %v294_v10 }
 0x2aa   :  { %v297_v11 = vpop.xlane.xlu2 %296 }
 0x2ab   :  { %v300_v12 = vmul.f32 0.03125, %v297_v11 }
 0x2ad   :  { %v302_v13 = vsub.f32 %v292_v8, %v300_v12  ;;  %v310_v19 = vmul.f32 %v300_v12, %v300_v12 }
 0x2af   :  { %v304_v14 = vmul.f32 %v302_v13, %v302_v13  ;;  %v312_v20 = vmul.f32 96.0, %v310_v19 }
 0x2b1   :  { %306 = vadd.xlane.f32.xlu0 %v304_v14 }
 0x2b2   :  { %v299_v15 = vpop.xlane.xlu2 %298 }
 0x2b3   :  { %v301_v16 = vmul.f32 0.03125, %v299_v15 }
 0x2b5   :  { %v303_v17 = vsub.f32 %v294_v10, %v301_v16  ;;  %v311_v23 = vmul.f32 %v301_v16, %v301_v16 }
 0x2b7   :  { %v305_v18 = vmul.f32 %v303_v17, %v303_v17  ;;  %v313_v26 = vmul.f32 96.0, %v311_v23 }
 0x2b9   :  { %308 = vadd.xlane.f32.xlu1 %v305_v18 }
 0x324   :  { %v307_v21 = vpop.xlane.xlu0 %306 }
 0x325   :  { %v314_v22 = vsub.f32 %v307_v21, %v312_v20 }
 0x327   :  { %v316_v24 = vmul.f32 0.03125, %v314_v22 }
 0x329   :  { %v318_v25 = vadd.f32 1e-05, %v316_v24 }
 0x32b   :  { %466 = vrsqrt.f32 %v318_v25  ;;  %vm326_vm7 = vweird.f32 %v318_v25 }
 0x32c   :  { %v309_v27 = vpop.xlane.xlu1 %308 }
 0x32d   :  { %v315_v28 = vsub.f32 %v309_v27, %v313_v26 }
 0x32f   :  { %v317_v29 = vmul.f32 0.03125, %v315_v28 }
 0x331   :  { %v467_v30 = vpop.eup %466  ;;  %v319_v31 = vadd.f32 1e-05, %v317_v29 }
 0x332   :  { %v321_v32 = vmul.f32 %v467_v30, %v318_v25  ;;  %vm327_vm6 = vweird.f32 %v467_v30 }
 0x333   :  { %468 = vrsqrt.f32 %v319_v31  ;;  %vm328_vm8 = vmor %vm326_vm7, %vm327_vm6  ;;  %vm336_vm10 = vweird.f32 %v319_v31 }
 0x334   :  { %v322_v33 = vmul.f32 %v467_v30, %v321_v32 }
 0x336   :  { %v323_v34 = vmul.f32 0.5, %v322_v33 }
 0x338   :  { %v324_v35 = vsub.f32 1.5, %v323_v34 }
 0x339   :  { %v469_v36 = vpop.eup %468 }
 0x33a   :  { %v325_v37 = vmul.f32 %v467_v30, %v324_v35  ;;  %v331_v38 = vmul.f32 %v469_v36, %v319_v31  ;;  %vm337_vm9 = vweird.f32 %v469_v36 }
 0x33b   :  { %vm338_vm11 = vmor %vm336_vm10, %vm337_vm9 }
 0x33c   :  { %v329_v40 = vsel %vm328_vm8, %v467_v30, %v325_v37  ;;  %v332_v41 = vmul.f32 %v469_v36, %v331_v38 }
 0x33d   :  { %v340_v42 = vmul.f32 %v329_v40, %v302_v13 }
 0x33e   :  { %v333_v45 = vmul.f32 0.5, %v332_v41 }
 0x33f   :  { %v343_v46 = vmul.f32 %v342_v39, %v340_v42 }
 0x340   :  { %v334_v47 = vsub.f32 1.5, %v333_v45 }
 0x341   :  { %v346_v48 = vadd.f32 %v345_v43, %v343_v46 }
 0x342   :  { %v335_v49 = vmul.f32 %v469_v36, %v334_v47 }
 0x343   :  { %v348_v50 = vadd.f32 %v346_v48, %v661_v55 }
 0x344   :  { %v339_v51 = vsel %vm338_vm11, %v469_v36, %v335_v49 }
 0x345   :  { %v341_v52 = vmul.f32 %v339_v51, %v303_v17  ;;  %350 = vst [vmem:[#allocation10] sm:$0xff] %v348_v50 }
 0x347   :  { %v344_v53 = vmul.f32 %v342_v39, %v341_v52 }
 0x349   :  { %v347_v44 = vadd.f32 %v345_v43, %v344_v53 }
 0x34b   :  { %v349_v54 = vadd.f32 %v347_v44, %v663_v56 }
 0x34d   :  { %351 = vst [vmem:[#allocation10 + $0x8] sm:$0xff] %v349_v54 }
 0x34e   :  { %364 = dma.vmem_to_hbm [thread:$0]  %s357_s3, 256, %s359_s13, [#allocation4], %s600_s25, %s600_s25, %s601_s26  }
 0x34f   :  { %596 = dma.done.wait [#allocation4], 256  }
 0x350   :  { %597 = vsyncadd [#allocation4], 4294967040 }
 0x351   :  { %369 = vsyncpa [#allocation3], 1 }
 0x352   :  { %370 = vsyncpa [#allocation6], 1 }
 0x353   :  { %371 = vsyncpa [#allocation9], 1 }
 0x354   :  { %372 = vsyncpa [#allocation4], 1 }

</bundles_post_ra>
